<compile_context>
chip_gen: v6e
topology: v6e:2x2x1
jax: 0.10.0
libtpu: 0.0.40
codegen_flags: <defaults>
</compile_context>

<pallas_src>
import math
from typing import NamedTuple

import jax
import jax.numpy as jnp
from jax import lax
from jax.experimental import pallas as pl
from jax.experimental.pallas import tpu as pltpu

EPS = 1e-12  # F.normalize default eps (clamp on the norm, i.e. EPS**2 on sumsq)


# --------------------------------------------------------------------------- #
# helpers
# --------------------------------------------------------------------------- #
def _round_up(x, m):
    return ((x + m - 1) // m) * m


def _default_tile_targets():
    """Per-generation (tm, tn, tk) targets sized around each chip's HBM ridge."""
    try:
        kind = jax.devices()[0].device_kind.lower()
    except Exception:  # pragma: no cover - defensive
        kind = ""
    if "v7" in kind:  # v7x: ridge ~310 flop/B, 64 MiB VMEM -> moderate tiles
        return 768, 768, 512
    if "v6" in kind:  # v6e: ridge ~600 flop/B, plenty of VMEM -> big tiles
        return 1024, 1024, 512
    return 512, 512, 512  # v5e and anything else


def _pick_tile(size, target, align, slack=1.25):
    """Tile (multiple of `align`) splitting `size` into near-equal blocks no
    larger than ~target, minimizing padding (ragged class counts / batches)."""
    target = max(int(target), align)
    size_al = _round_up(size, align)
    if size_al <= _round_up(int(target * slack), align):
        return size_al  # whole (aligned) dimension in a single block
    nb = -(-size // target)                    # ceil
    return _round_up(-(-size // nb), align)    # even split, aligned


def _vmem_limit_bytes(tm, tn, tk, in_bytes, out_bytes, w_buffers):
    wb = 2 if w_buffers is None else max(2, int(w_buffers))
    need = 2 * tm * tk * in_bytes          # double-buffered x tiles
    need += wb * tk * tn * in_bytes        # (multi-)buffered W tiles
    need += 2 * tm * tn * out_bytes        # double-buffered output tile
    need += tm * tn * 4                    # f32 accumulator scratch
    need += 4 * (tm + tn) * 8              # scale vectors (tiny)
    limit = int(need * 1.3) + (2 << 20)
    return max(16 << 20, min(limit, 64 << 20))


# --------------------------------------------------------------------------- #
# weight preprocessing (cacheable: compute once per weight update)
# --------------------------------------------------------------------------- #
class PreparedWeight(NamedTuple):
    wt: jax.Array        # [Dp, Op], compute dtype, transposed + zero-padded
    w_scale: jax.Array   # [1, Op], f32, 1/max(||w_row||, eps), zero-padded
    out_features: int
    in_features: int
    tn: int
    tk: int


def prepare_cosine_linear_weight(weight, *, compute_dtype=jnp.bfloat16,
                                 tn=None, tk=None):
    O, D = weight.shape
    _, tn_t, tk_t = _default_tile_targets()
    tn = _pick_tile(O, tn_t, 128) if tn is None else _round_up(int(tn), 128)
    tk = _pick_tile(D, tk_t, 128) if tk is None else _round_up(int(tk), 128)
    Op, Dp = _round_up(O, tn), _round_up(D, tk)

    w32 = weight.astype(jnp.float32)
    w_scale = lax.rsqrt(
        jnp.maximum(jnp.sum(w32 * w32, axis=1), EPS * EPS))[None, :]  # [1, O]

    # Transpose once to [D, O]: the kernel then runs an NN matmul (contraction
    # on W's sublane axis) -> clean DMA, no per-K-step XLU transpose.
    wt = jnp.pad(weight.T, ((0, Dp - D), (0, Op - O))).astype(compute_dtype)
    w_scale = jnp.pad(w_scale, ((0, 0), (0, Op - O)))
    return PreparedWeight(wt=wt, w_scale=w_scale,
                          out_features=O, in_features=D, tn=tn, tk=tk)


# --------------------------------------------------------------------------- #
# kernels
# --------------------------------------------------------------------------- #
def _cos_kernel_acc(x_ref, wt_ref, xs_ref, ws_ref, o_ref, acc_ref):
    """3-D grid (i, j, k): K-accumulated matmul with f32 scratch accumulator."""
    k = pl.program_id(2)

    @pl.when(k == 0)
    def _init():
        acc_ref[...] = jnp.zeros_like(acc_ref)

    # NN MXU matmul in compute dtype (bf16 by default), f32 accumulation.
    acc_ref[...] += jnp.dot(x_ref[...], wt_ref[...],
                            preferred_element_type=jnp.float32)

    @pl.when(k == pl.num_programs(2) - 1)
    def _finalize():
        # Rank-1 normalization scale (sigma folded into xs), applied once.
        o_ref[...] = (acc_ref[...] * xs_ref[...] * ws_ref[...]).astype(o_ref.dtype)


def _cos_kernel_single(x_ref, wt_ref, xs_ref, ws_ref, o_ref):
    """2-D grid (i, j): single contraction step, no scratch accumulator."""
    acc = jnp.dot(x_ref[...], wt_ref[...], preferred_element_type=jnp.float32)
    o_ref[...] = (acc * xs_ref[...] * ws_ref[...]).astype(o_ref.dtype)


# --------------------------------------------------------------------------- #
# wrapper
# --------------------------------------------------------------------------- #
def cosine_linear(x, weight, sigma=16.0, *, compute_dtype=jnp.bfloat16,
                  tm=None, tn=None, tk=None, w_buffers=None):
    """x: [B, in_features]; weight: [out_features, in_features] array or a
    PreparedWeight (cached preprocessing). Returns [B, out_features]."""
    B, D = x.shape
    itemsize = jnp.dtype(compute_dtype).itemsize
    row_align = max(8, 32 // itemsize)  # 8 for f32, 16 for bf16, 32 for int8/fp8
    tm_t, tn_t, tk_t = _default_tile_targets()

    if isinstance(weight, PreparedWeight):
        prepared = weight
        O = prepared.out_features
        assert prepared.in_features == D, "in_features mismatch"
        tn, tk = prepared.tn, prepared.tk
        tm = _pick_tile(B, tm if tm is not None else tm_t, row_align)
    else:
        O, D2 = weight.shape
        assert D == D2, "in_features mismatch"
        tm = _pick_tile(B, tm if tm is not None else tm_t, row_align)
        tn = _pick_tile(O, tn if tn is not None else tn_t, 128)
        tk = _pick_tile(D, tk if tk is not None else tk_t, 128)
        # Megacore (v7x) occupancy: want >= 2 parallel (i, j) output blocks.
        if (_round_up(B, tm) // tm) * (_round_up(O, tn) // tn) < 2 and O >= 256:
            tn = _round_up(-(-O // 2), 128)
        prepared = prepare_cosine_linear_weight(
            weight, compute_dtype=compute_dtype, tn=tn, tk=tk)

    wt, w_scale = prepared.wt, prepared.w_scale
    Dp, Op = wt.shape
    Bp = _round_up(B, tm)

    # ---- x-side prologue: f32 row norms (sigma folded), compute-dtype cast ----
    s = 1.0 if sigma is None else float(sigma)
    x32 = x.astype(jnp.float32)
    x_scale = s * lax.rsqrt(
        jnp.maximum(jnp.sum(x32 * x32, axis=1, keepdims=True), EPS * EPS))  # [B,1]

    # Zero padding is exact: padded K columns add nothing; padded rows/cols get
    # a zero scale and are sliced away.
    xp = jnp.pad(x, ((0, Bp - B), (0, Dp - D))).astype(compute_dtype)
    xsp = jnp.pad(x_scale, ((0, Bp - B), (0, 0)))

    nbi, nbj, nbk = Bp // tm, Op // tn, Dp // tk
    out_dtype = x.dtype
    vmem_limit = _vmem_limit_bytes(tm, tn, tk, itemsize,
                                   jnp.dtype(out_dtype).itemsize, w_buffers)

    def _w_spec(index_map):
        if w_buffers is None:
            return pl.BlockSpec((tk, tn), index_map)
        return pl.BlockSpec((tk, tn), index_map,
                            pipeline_mode=pl.Buffered(int(w_buffers)))

    if nbk == 1:
        # Single contraction step: skip the scratch accumulator entirely.
        out = pl.pallas_call(
            _cos_kernel_single,
            out_shape=jax.ShapeDtypeStruct((Bp, Op), out_dtype),
            grid_spec=pltpu.PrefetchScalarGridSpec(
                num_scalar_prefetch=0,
                grid=(nbi, nbj),
                in_specs=[
                    pl.BlockSpec((tm, tk), lambda i, j: (i, 0)),   # x tile
                    _w_spec(lambda i, j: (0, j)),                  # W^T tile (NN)
                    pl.BlockSpec((tm, 1), lambda i, j: (i, 0)),    # x scale (sigma)
                    pl.BlockSpec((1, tn), lambda i, j: (0, j)),    # w scale
                ],
                out_specs=pl.BlockSpec((tm, tn), lambda i, j: (i, j)),
            ),
            compiler_params=pltpu.CompilerParams(
                dimension_semantics=("parallel", "parallel"),
                vmem_limit_bytes=vmem_limit,
            ),
        )(xp, wt, xsp, w_scale)
    else:
        out = pl.pallas_call(
            _cos_kernel_acc,
            out_shape=jax.ShapeDtypeStruct((Bp, Op), out_dtype),
            grid_spec=pltpu.PrefetchScalarGridSpec(
                num_scalar_prefetch=0,
                grid=(nbi, nbj, nbk),
                in_specs=[
                    pl.BlockSpec((tm, tk), lambda i, j, k: (i, k)),  # x tile
                    _w_spec(lambda i, j, k: (k, j)),                 # W^T tile (NN)
                    pl.BlockSpec((tm, 1), lambda i, j, k: (i, 0)),   # x scale (sigma)
                    pl.BlockSpec((1, tn), lambda i, j, k: (0, j)),   # w scale
                ],
                out_specs=pl.BlockSpec((tm, tn), lambda i, j, k: (i, j)),
                scratch_shapes=[pltpu.VMEM((tm, tn), jnp.float32)],
            ),
            compiler_params=pltpu.CompilerParams(
                dimension_semantics=("parallel", "parallel", "arbitrary"),
                vmem_limit_bytes=vmem_limit,
            ),
        )(xp, wt, xsp, w_scale)

    if Bp == B and Op == O:
        return out
    return out[:B, :O]


# --------------------------------------------------------------------------- #
# self-test
# --------------------------------------------------------------------------- #
if __name__ == "__main__":
    key = jax.random.PRNGKey(0)
    kx, kw, kx2, kw2 = jax.random.split(key, 4)

    def _ref(x, w, sigma):
        xn = x / jnp.maximum(jnp.linalg.norm(x, axis=1, keepdims=True), EPS)
        wn = w / jnp.maximum(jnp.linalg.norm(w, axis=1, keepdims=True), EPS)
        return sigma * (xn @ wn.T)

    # ---- test 1: module-like small shapes, exact f32 path ----
    B, in_features, out_features = 8, 32, 16
    sigma = 16.0
    stdv = 1.0 / math.sqrt(in_features)  # reset_parameters(): U(-stdv, stdv)
    weight = jax.random.uniform(
        kw, (out_features, in_features), minval=-stdv, maxval=stdv, dtype=jnp.float32)
    x = jax.random.normal(kx, (B, in_features), dtype=jnp.float32)

    out_f32 = jax.block_until_ready(
        cosine_linear(x, weight, sigma=sigma, compute_dtype=jnp.float32))
    ref1 = _ref(x, weight, sigma)
    assert jnp.allclose(out_f32, ref1, atol=1e-5, rtol=1e-5), "f32 path mismatch"

    # same shapes on the fast bf16-MXU path (f32 accumulation + f32 scales)
    out_bf16 = jax.block_until_ready(cosine_linear(x, weight, sigma=sigma))
    assert jnp.allclose(out_bf16, ref1, atol=1e-1, rtol=1e-1), "bf16 path mismatch"

    # cached-weight path (preprocessing hoisted out of the forward)
    prepped = prepare_cosine_linear_weight(weight)
    out_prep = jax.block_until_ready(cosine_linear(x, prepped, sigma=sigma))
    assert jnp.allclose(out_prep, ref1, atol=1e-1, rtol=1e-1), "prepared path mismatch"

    # ---- test 2: multi-tile grid exercising K accumulation + ragged padding ----
    B2, D2, O2 = 16, 384, 256
    stdv2 = 1.0 / math.sqrt(D2)
    weight2 = jax.random.uniform(
        kw2, (O2, D2), minval=-stdv2, maxval=stdv2, dtype=jnp.float32)
    x2 = jax.random.normal(kx2, (B2, D2), dtype=jnp.float32)
    ref2 = _ref(x2, weight2, sigma)

    out2 = jax.block_until_ready(
        cosine_linear(x2, weight2, sigma=sigma, tm=16, tn=128, tk=128))
    assert jnp.allclose(out2, ref2, atol=1e-1, rtol=1e-1), "multi-K bf16 mismatch"

    out2_f32 = jax.block_until_ready(
        cosine_linear(x2, weight2, sigma=sigma, compute_dtype=jnp.float32,
                      tm=8, tn=128, tk=128))
    assert jnp.allclose(out2_f32, ref2, atol=1e-4, rtol=1e-4), "multi-K f32 mismatch"

    print("KERNEL_OK")
</pallas_src>

<mosaic_0001>
module attributes {stable_mosaic.version = 11 : i64} {
  func.func @_cos_kernel_single(%arg0: i32, %arg1: i32, %arg2: memref<8x128xf32, #tpu.memory_space<vmem>>, %arg3: memref<128x128xf32, #tpu.memory_space<vmem>>, %arg4: memref<8x1xf32, #tpu.memory_space<vmem>>, %arg5: memref<1x128xf32, #tpu.memory_space<vmem>>, %arg6: memref<8x128xf32, #tpu.memory_space<vmem>>) attributes {dimension_semantics = [#tpu.dimension_semantics<parallel>, #tpu.dimension_semantics<parallel>], iteration_bounds = array<i64: 1, 1>, scalar_prefetch = 0 : i64, scratch_operands = 0 : i64, tpu.core_type = #tpu.core_type<tc>, window_params = [{transform_indices = @transform_0, window_bounds = array<i64: 8, 128>}, {transform_indices = @transform_1, window_bounds = array<i64: 128, 128>}, {transform_indices = @transform_2, window_bounds = array<i64: 8, 1>}, {transform_indices = @transform_3, window_bounds = array<i64: 1, 128>}, {transform_indices = @transform_4, window_bounds = array<i64: 8, 128>}]} {
    %c0 = arith.constant 0 : index
    %c0_0 = arith.constant 0 : index
    %0 = vector.load %arg2[%c0, %c0_0] : memref<8x128xf32, #tpu.memory_space<vmem>>, vector<8x128xf32>
    %c0_1 = arith.constant 0 : index
    %c0_2 = arith.constant 0 : index
    %1 = vector.load %arg3[%c0_1, %c0_2] : memref<128x128xf32, #tpu.memory_space<vmem>>, vector<128x128xf32>
    %cst = arith.constant dense<0.000000e+00> : vector<8x128xf32>
    %2 = tpu.matmul %0, %1, %cst {dimension_numbers = #tpu.dot_dimension_numbers<[1], [0], [0], [1], [0, 0, 1, 1], [], []>} : vector<8x128xf32>, vector<128x128xf32>, vector<8x128xf32> -> vector<8x128xf32>
    %c0_3 = arith.constant 0 : index
    %c0_4 = arith.constant 0 : index
    %3 = vector.load %arg4[%c0_3, %c0_4] : memref<8x1xf32, #tpu.memory_space<vmem>>, vector<8x1xf32>
    %4 = vector.broadcast %3 : vector<8x1xf32> to vector<8x128xf32>
    %5 = arith.mulf %2, %4 : vector<8x128xf32>
    %c0_5 = arith.constant 0 : index
    %c0_6 = arith.constant 0 : index
    %6 = vector.load %arg5[%c0_5, %c0_6] : memref<1x128xf32, #tpu.memory_space<vmem>>, vector<1x128xf32>
    %7 = vector.broadcast %6 : vector<1x128xf32> to vector<8x128xf32>
    %8 = arith.mulf %5, %7 : vector<8x128xf32>
    %c0_7 = arith.constant 0 : index
    %c0_8 = arith.constant 0 : index
    %9 = vector.load %arg6[%c0_7, %c0_8] : memref<8x128xf32, #tpu.memory_space<vmem>>, vector<8x128xf32>
    tpu.vector_store %arg6[%c0_7, %c0_8], %8 {strides = array<i32>} : memref<8x128xf32, #tpu.memory_space<vmem>>, vector<8x128xf32>,
    return
  }
  func.func @transform_0(%arg0: i32, %arg1: i32) -> (i32, i32) {
    %c0_i32 = arith.constant 0 : i32
    %c0_i32_0 = arith.constant 0 : i32
    return %arg0, %c0_i32 : i32, i32
  }
  func.func @transform_1(%arg0: i32, %arg1: i32) -> (i32, i32) {
    %c0_i32 = arith.constant 0 : i32
    %c0_i32_0 = arith.constant 0 : i32
    return %c0_i32, %arg1 : i32, i32
  }
  func.func @transform_2(%arg0: i32, %arg1: i32) -> (i32, i32) {
    %c0_i32 = arith.constant 0 : i32
    %c0_i32_0 = arith.constant 0 : i32
    return %arg0, %c0_i32 : i32, i32
  }
  func.func @transform_3(%arg0: i32, %arg1: i32) -> (i32, i32) {
    %c0_i32 = arith.constant 0 : i32
    %c0_i32_0 = arith.constant 0 : i32
    return %c0_i32, %arg1 : i32, i32
  }
  func.func @transform_4(%arg0: i32, %arg1: i32) -> (i32, i32) {
    %c0_i32 = arith.constant 0 : i32
    return %arg0, %arg1 : i32, i32
  }
}

</mosaic_0001>

<bundles_post_ra>
// kernel: tpu_custom_call.1
= control target key start
LH: loop header
LB: loop body
LE: loop exit
PB: predicated region body
PF: predicated region fallthrough
CT: control target
= control target key end

     0   :  { %9 = vsyncpa [#allocation3], 0  ;;  %s302_s0 = inlined_call_operand.vmem [shape: f32[8,128], index: 0, kind: input, shape index: {}]   ;;  %s303_s1 = inlined_call_operand.hbm [shape: f32[128,128], index: 1, kind: input, shape index: {}]   ;;  %s304_s2 = inlined_call_operand.vmem [shape: f32[8,1], index: 2, kind: input, shape index: {}]   ;;  %s305_s3 = inlined_call_operand.vmem [shape: f32[1,128], index: 3, kind: input, shape index: {}]   ;;  %s306_s4 = inlined_call_operand.hbm [shape: f32[8,128], index: 4, kind: output, shape index: {}]  }
   0x1   :  { %10 = vsyncpa [#allocation4], 0  ;;  %s255_s15 = smov [#allocation2]  }
   0x2   :  { %s18_s16 = sshll.u32 %s255_s15, 4  ;;  %s19_s16 = int_to_ptr.vmem [resolvable:$true] %s18_s16 }
   0x3   :  { %s219_s17 = scalar_lea.vmem %s19_s16, 2048  ;;  %p224_p1 = scmp.lt.s32.totalorder %s19_s16, %s19_s16 }
   0x4   :  { %p220_p0 = scmp.ne.s32.totalorder %s19_s16, %s219_s17  ;;  %p225_p2 = scmp.lt.s32.totalorder %s219_s17, %s219_s17 }
   0x6   :  { %p226_p3 = por %p225_p2, %p224_p1 }
   0x8   :  { %p227_p4 = pnand %p226_p3, %p220_p0 }
   0xa   :  { %230 = shalt.err (!%p227_p4)
}
   0xb   :  { %s256_s18 = smov 128   ;;  %s257_s19 = smov 8  }
   0xc   :  { %24 = dma.hbm_to_vmem [thread:$0]  %s303_s1, 2048, %s19_s16, [#allocation3], %s256_s18, %s256_s18, %s257_s19  }
   0xd   :  { %251 = dma.done.wait [#allocation3], 2048  }
   0xe   :  { %252 = vsyncadd [#allocation3], 4294965248  ;;  %v258_v0 = vmov 0.0   ;;  %vm259_vm0 = vmmov 0   ;;  %v260_v1 = vmov 0   ;;  %v48_v2 = vld [vmem:[#allocation2 + $0x78] sm:$0xff] }
   0xf   :  { %168 = vmatprep.subr.mxu0 %v258_v0  ;;  %200 = vmatprep.mubr.msk.f32.mxu0 %vm259_vm0, %v258_v0  ;;  %v47_v3 = vld [vmem:[#allocation2 + $0x70] sm:$0xff]  ;;  %v46_v4 = vld [vmem:[#allocation2 + $0x68] sm:$0xff]  ;;  %v45_v5 = vld [vmem:[#allocation2 + $0x60] sm:$0xff]  ;;  %s261_s26 = smov [#allocation5]  }
  0x10   :  { %210 = vset.pattern.permute.xlu0 %v260_v1  ;;  %169 = vmatpush3.msra.mxu0 %v48_v2  ;;  %v119_v6 = vld [vmem:[%s304_s2] sm:$0xff]  ;;  %v44_v7 = vld [vmem:[#allocation2 + $0x58] sm:$0xff]  ;;  %v43_v8 = vld [vmem:[#allocation2 + $0x50] sm:$0xff]  ;;  %s141_s27 = sshll.u32 %s261_s26, 4  ;;  %s142_s27 = int_to_ptr.vmem [resolvable:$true] %s141_s27 }
  0x11   :  { %170 = vmatprep.subr.mxu0 %v258_v0  ;;  %122 = vperm.xlu0 %210, %v119_v6   ;;  %v42_v9 = vld [vmem:[#allocation2 + $0x48] sm:$0xff]  ;;  %v41_v10 = vld [vmem:[#allocation2 + $0x40] sm:$0xff]  ;;  %v40_v11 = vld [vmem:[#allocation2 + $0x38] sm:$0xff]  ;;  %s231_s28 = scalar_lea.vmem %s142_s27, 128  ;;  %p236_p6 = scmp.lt.s32.totalorder %s142_s27, %s142_s27 }
  0x12   :  { %171 = vmatpush3.msra.mxu0 %v47_v3  ;;  %v39_v12 = vld [vmem:[#allocation2 + $0x30] sm:$0xff]  ;;  %v38_v13 = vld [vmem:[#allocation2 + $0x28] sm:$0xff]  ;;  %v37_v14 = vld [vmem:[#allocation2 + $0x20] sm:$0xff]  ;;  %p232_p5 = scmp.ne.s32.totalorder %s142_s27, %s231_s28  ;;  %p237_p7 = scmp.lt.s32.totalorder %s231_s28, %s231_s28 }
  0x13   :  { %172 = vmatprep.subr.mxu0 %v258_v0  ;;  %v36_v15 = vld [vmem:[#allocation2 + $0x18] sm:$0xff]  ;;  %v35_v16 = vld [vmem:[#allocation2 + $0x10] sm:$0xff]  ;;  %v34_v17 = vld [vmem:[#allocation2 + $0x8] sm:$0xff] }
  0x14   :  { %173 = vmatpush3.msra.mxu0 %v46_v4  ;;  %v33_v18 = vld [vmem:[#allocation2] sm:$0xff]  ;;  %p238_p8 = por %p237_p7, %p236_p6 }
  0x15   :  { %174 = vmatprep.subr.mxu0 %v258_v0  ;;  %v32_v19 = vld [vmem:[%s302_s0] sm:$0xff] }
  0x16   :  { %175 = vmatpush3.msra.mxu0 %v45_v5  ;;  %v150_v22 = vld [vmem:[%s305_s3] ss:$0 sm:$0xff]  ;;  %p239_p9 = pnand %p238_p8, %p232_p5 }
  0x17   :  { %176 = vmatprep.subr.mxu0 %v258_v0 }
  0x18   :  { %177 = vmatpush3.msra.mxu0 %v44_v7 }
  0x19   :  { %178 = vmatprep.subr.mxu0 %v258_v0 }
  0x1a   :  { %179 = vmatpush3.msra.mxu0 %v43_v8 }
  0x1b   :  { %180 = vmatprep.subr.mxu0 %v258_v0 }
  0x1c   :  { %181 = vmatpush3.msra.mxu0 %v42_v9 }
  0x1d   :  { %182 = vmatprep.subr.mxu0 %v258_v0 }
  0x1e   :  { %183 = vmatpush3.msra.mxu0 %v41_v10 }
  0x1f   :  { %184 = vmatprep.subr.mxu0 %v258_v0 }
  0x20   :  { %185 = vmatpush3.msra.mxu0 %v40_v11 }
  0x21   :  { %186 = vmatprep.subr.mxu0 %v258_v0 }
  0x22   :  { %187 = vmatpush3.msra.mxu0 %v39_v12 }
  0x23   :  { %188 = vmatprep.subr.mxu0 %v258_v0 }
  0x24   :  { %189 = vmatpush3.msra.mxu0 %v38_v13 }
  0x25   :  { %190 = vmatprep.subr.mxu0 %v258_v0 }
  0x26   :  { %191 = vmatpush3.msra.mxu0 %v37_v14 }
  0x27   :  { %192 = vmatprep.subr.mxu0 %v258_v0 }
  0x28   :  { %193 = vmatpush3.msra.mxu0 %v36_v15 }
  0x29   :  { %194 = vmatprep.subr.mxu0 %v258_v0 }
  0x2a   :  { %195 = vmatpush3.msra.mxu0 %v35_v16 }
  0x2b   :  { %196 = vmatprep.subr.mxu0 %v258_v0 }
  0x2c   :  { %197 = vmatpush3.msra.mxu0 %v34_v17 }
  0x2d   :  { %198 = vmatprep.subr.mxu0 %v258_v0 }
  0x2e   :  { %199 = vmatpush3.msra.mxu0 %v33_v18 }
  0x2f   :  { %201 = vmatmul.mubr.f32.vlgmr.msra.gmra.mxu0 %v32_v19 }
  0x8c   :  { %v123_v20 = vpop.permute.xlu0 %122 }
  0xef   :  { %v115_v21 = vpop.f32.mrf.mxu0 }
  0xf0   :  { %v125_v23 = vmul.f32 %v123_v20, %v115_v21 }
  0xf1   :  { %v202_v24 = vpop.f32.mrf.mxu0 }
  0xf2   :  { %v133_v25 = vmul.f32 %v150_v22, %v125_v23 }
  0xf4   :  { %134 = vst [vmem:[#allocation5] sm:$0xff] %v133_v25 }
  0xf5   :  { %242 = shalt.err (!%p239_p9)
}
  0xf6   :  { %144 = dma.vmem_to_hbm [thread:$0]  %s142_s27, 128, %s306_s4, [#allocation4]  }
  0xf7   :  { %253 = dma.done.wait [#allocation4], 128  }
  0xf8   :  { %254 = vsyncadd [#allocation4], 4294967168 }
  0xf9   :  { %148 = vsyncpa [#allocation3], 1 }
  0xfa   :  { %149 = vsyncpa [#allocation4], 1 }

</bundles_post_ra>
